<compile_context>
chip_gen: v5e
topology: v5e:2x2
jax: 0.10.0
libtpu: 0.0.40
codegen_flags: <defaults>
</compile_context>

<pallas_src>
import functools

import jax
import jax.numpy as jnp
from jax.experimental import pallas as pl
from jax.experimental.pallas import tpu as pltpu


# ---------------------------------------------------------------------------
# Kernels
# ---------------------------------------------------------------------------
def _rbf_full_kernel(params_ref, x1_ref, x2t_ref, sq1_ref, sq2_ref, out_ref):
    """Cross-covariance tile.

    params_ref (SMEM, (2,)): [scale^2, -1/lengthscale^2] (only [0] used here)
    x1_ref  : (TM, Dp)   row-major points
    x2t_ref : (Dp, TN)   pre-transposed points, pre-scaled by 2/ls^2
    sq1_ref : (TM, 1)    -||x1_i||^2 / ls^2   (precomputed, per row-tile)
    sq2_ref : (1,  TN)   -||x2_j||^2 / ls^2   (precomputed, per col-tile)
    out_ref : (TM, TN)

    out = sc^2 * exp( min( 2*x1.x2/ls^2 - ||x1||^2/ls^2 - ||x2||^2/ls^2 , 0 ) )
    """
    sc2 = params_ref[0]
    cross = jnp.dot(x1_ref[...], x2t_ref[...],
                    preferred_element_type=jnp.float32)        # MXU (TM, TN)
    arg = cross + sq1_ref[...] + sq2_ref[...]                  # 2 VPU adds
    arg = jnp.minimum(arg, 0.0)                                # clamp_min_(0) on sd
    out_ref[...] = sc2 * jnp.exp(arg)                          # EUP exp + VPU mul


def _rbf_diag_kernel(params_ref, x1t_ref, x2t_ref, out_ref):
    """Diagonal: out[0, i] = sc^2 * exp(-||x1_i - x2_i||^2 / ls^2).

    Inputs are fed transposed (Dp, TN) so the reduction is over sublanes and
    the output row is lane-dense.
    """
    sc2 = params_ref[0]
    neg_inv_ls2 = params_ref[1]
    d = x1t_ref[...] - x2t_ref[...]                            # (Dp, TN)
    sd = jnp.sum(d * d, axis=0, keepdims=True)                 # (1, TN)
    out_ref[...] = sc2 * jnp.exp(sd * neg_inv_ls2)


# ---------------------------------------------------------------------------
# Wrapper (glue: shape normalization, padding, parameter folding, tiling)
# ---------------------------------------------------------------------------
def _round_up(n, m):
    return ((n + m - 1) // m) * m


def _pick_tile(n, granule, t_max, waste_frac=0.125):
    """Largest tile (multiple of `granule`, <= t_max) with bounded padding waste."""
    n_g = _round_up(n, granule)
    if n_g <= t_max:
        return n_g                       # single tile, minimal padding
    budget = max(int(n * waste_frac), granule)
    for t in range(t_max, granule - 1, -granule):
        if _round_up(n, t) - n <= budget:
            return t
    return granule


_VMEM_LIMIT = 32 * 1024 * 1024           # safe on v5e/v6e/v7x; usage is ~8.5 MiB max


@functools.partial(jax.jit, static_argnames=("diag",))
def rbf_kernel(x1, x2, lengthscale, scale, diag=False):
    x1 = jnp.asarray(x1, jnp.float32)
    x2 = jnp.asarray(x2, jnp.float32)
    if x1.ndim == 1:
        x1 = x1[:, None]
    if x2.ndim == 1:
        x2 = x2[:, None]
    assert x1.shape[-1] == x2.shape[-1], "Inputs are different dimensions."

    ls = jnp.asarray(lengthscale, jnp.float32)
    sc = jnp.asarray(scale, jnp.float32)
    sc2 = sc * sc
    inv_ls2 = 1.0 / (ls * ls)
    # Hoisted scalars: [scale^2, -1/lengthscale^2].
    params = jnp.stack([sc2, -inv_ls2]).astype(jnp.float32)

    smem_spec = pl.BlockSpec(memory_space=pltpu.MemorySpace.SMEM)

    if diag:
        assert x1.shape == x2.shape, "Inputs must be the same shape."
        n, d = x1.shape
        dp = _round_up(d, 8)                                   # sublane granule
        TN = min(4096, _round_up(n, 128))
        npad = _round_up(n, TN)
        x1t = jnp.pad(x1, ((0, npad - n), (0, dp - d))).T      # (dp, npad)
        x2t = jnp.pad(x2, ((0, npad - n), (0, dp - d))).T      # (dp, npad)

        out = pl.pallas_call(
            _rbf_diag_kernel,
            out_shape=jax.ShapeDtypeStruct((1, npad), jnp.float32),
            grid=(npad // TN,),
            in_specs=[
                smem_spec,
                pl.BlockSpec((dp, TN), lambda i: (0, i)),
                pl.BlockSpec((dp, TN), lambda i: (0, i)),
            ],
            out_specs=pl.BlockSpec((1, TN), lambda i: (0, i)),
            compiler_params=pltpu.CompilerParams(
                dimension_semantics=("parallel",),
                vmem_limit_bytes=_VMEM_LIMIT,
            ),
        )(params, x1t, x2t)
        return out[0, :n]

    n1, d = x1.shape
    n2, _ = x2.shape
    dp = _round_up(d, 8)                                       # sublane granule

    # Adaptive tiles: as large as possible (fewer grid steps, lane-dense
    # unmasked stores) while bounding padded/dead work to ~12.5%.
    TM = _pick_tile(n1, 8, 512)
    TN = _pick_tile(n2, 128, 2048)
    n1p = _round_up(n1, TM)
    n2p = _round_up(n2, TN)
    grid_m = n1p // TM
    grid_n = n2p // TN
    # v7x megacore: avoid a 1-step grid when N2 can be split into two tiles.
    if grid_m == 1 and grid_n == 1 and n2p >= 256 and (n2p // 2) % 128 == 0:
        TN = n2p // 2
        grid_n = 2

    x1p = jnp.pad(x1, ((0, n1p - n1), (0, dp - d)))            # (n1p, dp)
    x2p = jnp.pad(x2, ((0, n2p - n2), (0, dp - d)))            # (n2p, dp)

    # Fold lengthscale into the operands (no per-element scaling in-kernel):
    #   cross = x1 . (2/ls^2 * x2)^T ;  sq*s = -||x*||^2 / ls^2
    x2t = (x2p * (2.0 * inv_ls2)).T                            # (dp, n2p)
    sq1s = jnp.sum(x1p * x1p, axis=-1, keepdims=True) * (-inv_ls2)        # (n1p, 1)
    sq2s = (jnp.sum(x2p * x2p, axis=-1, keepdims=True) * (-inv_ls2)).T    # (1, n2p)

    cost = pl.CostEstimate(
        flops=2 * n1p * n2p * dp + 4 * n1p * n2p,
        transcendentals=n1p * n2p,
        bytes_accessed=4 * (
            (n1p * dp + n1p) * grid_n          # x1 / sq1s re-read per j step
            + (n2p * dp + n2p) * grid_m        # x2t / sq2s re-read per i step
            + n1p * n2p                        # output writeback
        ),
    )

    out = pl.pallas_call(
        _rbf_full_kernel,
        out_shape=jax.ShapeDtypeStruct((n1p, n2p), jnp.float32),
        grid=(grid_m, grid_n),
        in_specs=[
            smem_spec,
            pl.BlockSpec((TM, dp), lambda i, j: (i, 0)),
            pl.BlockSpec((dp, TN), lambda i, j: (0, j)),
            pl.BlockSpec((TM, 1), lambda i, j: (i, 0)),
            pl.BlockSpec((1, TN), lambda i, j: (0, j)),
        ],
        out_specs=pl.BlockSpec((TM, TN), lambda i, j: (i, j)),
        compiler_params=pltpu.CompilerParams(
            dimension_semantics=("parallel", "parallel"),
            vmem_limit_bytes=_VMEM_LIMIT,
        ),
        cost_estimate=cost,
    )(params, x1p, x2t, sq1s, sq2s)
    return out[:n1, :n2]


# ---------------------------------------------------------------------------
# Pure-JAX reference (mirrors the PyTorch forward exactly)
# ---------------------------------------------------------------------------
def rbf_kernel_ref(x1, x2, lengthscale, scale, diag=False):
    x1 = jnp.asarray(x1, jnp.float32)
    x2 = jnp.asarray(x2, jnp.float32)
    if x1.ndim == 1:
        x1 = x1[:, None]
    if x2.ndim == 1:
        x2 = x2[:, None]
    if not diag:
        x1 = x1[:, None, :]
        x2 = x2[None, :, :]
    sd = jnp.maximum((x1 - x2) ** 2, 0.0)
    sd_ = (sd / lengthscale**2).sum(-1)
    return scale**2 * jnp.exp(-sd_)


if __name__ == "__main__":
    # Deterministic parameters (mirrors nn.Parameter(torch.tensor(...)) init,
    # with slightly non-trivial values for a stronger check).
    lengthscale = 0.7
    scale = 1.3

    key = jax.random.PRNGKey(0)
    k1, k2 = jax.random.split(key)
    x1 = jax.random.normal(k1, (20, 3), dtype=jnp.float32)   # N1=20, D=3
    x2 = jax.random.normal(k2, (30, 3), dtype=jnp.float32)   # N2=30, D=3

    # Full covariance matrix.
    cov = rbf_kernel(x1, x2, lengthscale, scale, diag=False)
    jax.block_until_ready(cov)
    cov_ref = rbf_kernel_ref(x1, x2, lengthscale, scale, diag=False)
    assert cov.shape == (20, 30)
    assert jnp.allclose(cov, cov_ref, atol=1e-5, rtol=1e-5)

    # Diagonal path (requires same-shape inputs).
    diag = rbf_kernel(x1, x1, lengthscale, scale, diag=True)
    jax.block_until_ready(diag)
    diag_ref = rbf_kernel_ref(x1, x1, lengthscale, scale, diag=True)
    assert diag.shape == (20,)
    assert jnp.allclose(diag, diag_ref, atol=1e-5, rtol=1e-5)

    # 1-D input promotion path (x.unsqueeze(1)).
    v1 = jax.random.normal(k1, (16,), dtype=jnp.float32)
    v2 = jax.random.normal(k2, (16,), dtype=jnp.float32)
    cov1d = rbf_kernel(v1, v2, lengthscale, scale, diag=False)
    jax.block_until_ready(cov1d)
    cov1d_ref = rbf_kernel_ref(v1, v2, lengthscale, scale, diag=False)
    assert jnp.allclose(cov1d, cov1d_ref, atol=1e-5, rtol=1e-5)

    # Medium case: exercises adaptive tiles + the N2 megacore split (grid 1x2).
    k3, k4 = jax.random.split(k2)
    y1 = jax.random.normal(k3, (300, 5), dtype=jnp.float32)
    y2 = jax.random.normal(k4, (700, 5), dtype=jnp.float32)
    cov_big = rbf_kernel(y1, y2, lengthscale, scale, diag=False)
    jax.block_until_ready(cov_big)
    cov_big_ref = rbf_kernel_ref(y1, y2, lengthscale, scale, diag=False)
    assert cov_big.shape == (300, 700)
    assert jnp.allclose(cov_big, cov_big_ref, atol=1e-5, rtol=1e-5)

    # Larger case: exercises a multi-tile grid along both axes.
    k5, k6 = jax.random.split(k4)
    z1 = jax.random.normal(k5, (600, 4), dtype=jnp.float32)
    z2 = jax.random.normal(k6, (900, 4), dtype=jnp.float32)
    cov_xl = rbf_kernel(z1, z2, lengthscale, scale, diag=False)
    jax.block_until_ready(cov_xl)
    cov_xl_ref = rbf_kernel_ref(z1, z2, lengthscale, scale, diag=False)
    assert cov_xl.shape == (600, 900)
    assert jnp.allclose(cov_xl, cov_xl_ref, atol=1e-5, rtol=1e-5)

    print("KERNEL_OK")
</pallas_src>

<mosaic_0001>
module attributes {stable_mosaic.version = 11 : i64} {
  func.func @_rbf_full_kernel(%arg0: i32, %arg1: i32, %arg2: memref<2xf32, #tpu.memory_space<smem>>, %arg3: memref<24x8xf32, #tpu.memory_space<vmem>>, %arg4: memref<8x128xf32, #tpu.memory_space<vmem>>, %arg5: memref<24x1xf32, #tpu.memory_space<vmem>>, %arg6: memref<1x128xf32, #tpu.memory_space<vmem>>, %arg7: memref<24x128xf32, #tpu.memory_space<vmem>>) attributes {dimension_semantics = [#tpu.dimension_semantics<parallel>, #tpu.dimension_semantics<parallel>], iteration_bounds = array<i64: 1, 1>, scalar_prefetch = 0 : i64, scratch_operands = 0 : i64, tpu.core_type = #tpu.core_type<tc>, window_params = [{transform_indices = @transform_0, window_bounds = array<i64: 2>}, {transform_indices = @transform_1, window_bounds = array<i64: 24, 8>}, {transform_indices = @transform_2, window_bounds = array<i64: 8, 128>}, {transform_indices = @transform_3, window_bounds = array<i64: 24, 1>}, {transform_indices = @transform_4, window_bounds = array<i64: 1, 128>}, {transform_indices = @transform_5, window_bounds = array<i64: 24, 128>}]} {
    %c0 = arith.constant 0 : index
    %0 = memref.load %arg2[%c0] : memref<2xf32, #tpu.memory_space<smem>>
    %c0_0 = arith.constant 0 : index
    %c0_1 = arith.constant 0 : index
    %1 = vector.load %arg3[%c0_0, %c0_1] : memref<24x8xf32, #tpu.memory_space<vmem>>, vector<24x8xf32>
    %c0_2 = arith.constant 0 : index
    %c0_3 = arith.constant 0 : index
    %2 = vector.load %arg4[%c0_2, %c0_3] : memref<8x128xf32, #tpu.memory_space<vmem>>, vector<8x128xf32>
    %cst = arith.constant dense<0.000000e+00> : vector<24x128xf32>
    %3 = tpu.matmul %1, %2, %cst {dimension_numbers = #tpu.dot_dimension_numbers<[1], [0], [0], [1], [0, 0, 1, 1], [], []>} : vector<24x8xf32>, vector<8x128xf32>, vector<24x128xf32> -> vector<24x128xf32>
    %c0_4 = arith.constant 0 : index
    %c0_5 = arith.constant 0 : index
    %4 = vector.load %arg5[%c0_4, %c0_5] : memref<24x1xf32, #tpu.memory_space<vmem>>, vector<24x1xf32>
    %5 = vector.broadcast %4 : vector<24x1xf32> to vector<24x128xf32>
    %6 = arith.addf %3, %5 : vector<24x128xf32>
    %c0_6 = arith.constant 0 : index
    %c0_7 = arith.constant 0 : index
    %7 = vector.load %arg6[%c0_6, %c0_7] : memref<1x128xf32, #tpu.memory_space<vmem>>, vector<1x128xf32>
    %8 = vector.broadcast %7 : vector<1x128xf32> to vector<24x128xf32>
    %9 = arith.addf %6, %8 : vector<24x128xf32>
    %cst_8 = arith.constant 0.000000e+00 : f32
    %10 = vector.broadcast %cst_8 : f32 to vector<24x128xf32>
    %11 = arith.minimumf %9, %10 : vector<24x128xf32>
    %12 = math.exp %11 : vector<24x128xf32>
    %13 = vector.broadcast %0 : f32 to vector<24x128xf32>
    %14 = arith.mulf %13, %12 : vector<24x128xf32>
    %c0_9 = arith.constant 0 : index
    %c0_10 = arith.constant 0 : index
    %15 = vector.load %arg7[%c0_9, %c0_10] : memref<24x128xf32, #tpu.memory_space<vmem>>, vector<24x128xf32>
    tpu.vector_store %arg7[%c0_9, %c0_10], %14 {strides = array<i32>} : memref<24x128xf32, #tpu.memory_space<vmem>>, vector<24x128xf32>,
    return
  }
  func.func @transform_0(%arg0: i32, %arg1: i32) -> i32 {
    %c0_i32 = arith.constant 0 : i32
    %c0_i32_0 = arith.constant 0 : i32
    return %c0_i32 : i32
  }
  func.func @transform_1(%arg0: i32, %arg1: i32) -> (i32, i32) {
    %c0_i32 = arith.constant 0 : i32
    %c0_i32_0 = arith.constant 0 : i32
    return %arg0, %c0_i32 : i32, i32
  }
  func.func @transform_2(%arg0: i32, %arg1: i32) -> (i32, i32) {
    %c0_i32 = arith.constant 0 : i32
    %c0_i32_0 = arith.constant 0 : i32
    return %c0_i32, %arg1 : i32, i32
  }
  func.func @transform_3(%arg0: i32, %arg1: i32) -> (i32, i32) {
    %c0_i32 = arith.constant 0 : i32
    %c0_i32_0 = arith.constant 0 : i32
    return %arg0, %c0_i32 : i32, i32
  }
  func.func @transform_4(%arg0: i32, %arg1: i32) -> (i32, i32) {
    %c0_i32 = arith.constant 0 : i32
    %c0_i32_0 = arith.constant 0 : i32
    return %c0_i32, %arg1 : i32, i32
  }
  func.func @transform_5(%arg0: i32, %arg1: i32) -> (i32, i32) {
    %c0_i32 = arith.constant 0 : i32
    return %arg0, %arg1 : i32, i32
  }
}

</mosaic_0001>

<bundles_post_ra>
// kernel: rbf_kernel.1
= control target key start
LH: loop header
LB: loop body
LE: loop exit
PB: predicated region body
PF: predicated region fallthrough
CT: control target
= control target key end

     0   :  { %10 = vsyncpa [#allocation4], 0  ;;  %s259_s0 = inlined_call_operand.vmem [shape: f32[2], index: 0, kind: input, shape index: {}]   ;;  %s260_s1 = inlined_call_operand.vmem [shape: f32[24,8], index: 1, kind: input, shape index: {}]   ;;  %s261_s2 = inlined_call_operand.vmem [shape: f32[8,128], index: 2, kind: input, shape index: {}]   ;;  %s262_s3 = inlined_call_operand.vmem [shape: f32[24,1], index: 3, kind: input, shape index: {}]   ;;  %s263_s4 = inlined_call_operand.vmem [shape: f32[1,128], index: 4, kind: input, shape index: {}]   ;;  %s264_s5 = inlined_call_operand.hbm [shape: f32[24,128], index: 5, kind: output, shape index: {}]  }
   0x1   :  { %11 = vsyncpa [#allocation3], 0  ;;  %s17_s20 = sshll.u32 %s259_s0, 4  ;;  %s194_s21 = smov [#allocation2]   ;;  %s18_s20 = int_to_ptr.vmem [resolvable:$true] %s17_s20 }
   0x2   :  { %20 = dma.vmem_to_smem %s18_s20, 16, %s194_s21, [#allocation4]  }
   0x3   :  { %190 = dma.done.wait [#allocation4], 16  }
   0x4   :  { %191 = vsyncadd [#allocation4], 4294967280 }
   0x5   :  { %33 = sfence }
   0x6   :  { %v38_v0 = vld [vmem:[%s261_s2] sm:$0xff]  ;;  %vm57_vm0 = vcmask 64512   ;;  %v36_v2 = vld [vmem:[%s260_s1 + $0x8] sm:$0xff]  ;;  %v37_v3 = vld [vmem:[%s260_s1 + $0x10] sm:$0xff]  ;;  %v195_v5 = vmov 0   ;;  %s34_s10 = sld [smem:[#allocation2]] }
   0x7   :  { %v35_v1 = vld [vmem:[%s260_s1] sm:$0xff]  ;;  %82 = vmatpush.msra.mxu0 %v38_v0  ;;  %138 = vmatpush.msra.mxu1 %v38_v0  ;;  %v41_v6 = vld [vmem:[%s262_s3 + $0x10] sm:$0xff]  ;;  %v40_v7 = vld [vmem:[%s262_s3 + $0x8] sm:$0xff]  ;;  %s122_s13 = sshll.u32 %s264_s5, 4  ;;  %s197_s14 = smov 128   ;;  %s123_s13 = int_to_ptr.hbm [resolvable:$true] %s122_s13 }
   0x8   :  { %v39_v4 = vld [vmem:[%s262_s3] sm:$0xff]  ;;  %139 = vmatpush.msra.mxu2 %v38_v0  ;;  %145 = vset.pattern.permute.xlu0 %v195_v5  ;;  %s196_s3 = smov [#allocation5]   ;;  %s198_s15 = smov 8  }
   0x9   :  { %135 = vmatmul.msk.f32.vlgmr.msra.gmra.mxu0 %vm57_vm0, %v35_v1  ;;  %136 = vmatmul.msk.f32.vlgmr.msra.gmra.mxu1 %vm57_vm0, %v36_v2  ;;  %v147_v10 = vld [vmem:[%s263_s4] ss:$0 sm:$0xff]  ;;  %s120_s4 = sshll.u32 %s196_s3, 4  ;;  %s121_s4 = int_to_ptr.vmem [resolvable:$true] %s120_s4 }
   0xa   :  { %137 = vmatmul.msk.f32.vlgmr.msra.gmra.mxu2 %vm57_vm0, %v37_v3  ;;  %44 = vperm.xlu0 %145, %v39_v4  }
   0xb   :  { %146 = vset.pattern.permute.xlu1 %v195_v5 }
   0xc   :  { %54 = vperm.xlu1 %146, %v41_v6   ;;  %v109_v26 = vstv %s34_s10 }
  0x12   :  { %49 = vperm.xlu0 %145, %v40_v7  }
  0x7c   :  { %v45_v8 = vpop.permute.xlu0 %44 }
  0x7e   :  { %v55_v19 = vpop.permute.xlu1 %54 }
  0x84   :  { %v50_v9 = vpop.permute.xlu0 %49 }
  0x86   :  { %v84_v11 = vpop.f32.mrf.mxu0  ;;  %v87_v12 = vpop.f32.mrf.mxu1 }
  0x87   :  { %v85_v13 = vadd.f32 %v84_v11, %v45_v8  ;;  %v88_v14 = vadd.f32 %v87_v12, %v50_v9 }
  0x89   :  { %v97_v15 = vadd.f32 %v147_v10, %v85_v13  ;;  %v98_v16 = vadd.f32 %v147_v10, %v88_v14 }
  0x8b   :  { %v100_v17 = vmin.f32 %v97_v15, 0.0  ;;  %v101_v18 = vmin.f32 %v98_v16, 0.0 }
  0x8d   :  { %v103_v20 = vmul.f32 1.442695, %v100_v17  ;;  %v105_v21 = vmul.f32 1.442695, %v101_v18  ;;  %v90_v22 = vpop.f32.mrf.mxu2 }
  0x8e   :  { %v91_v23 = vadd.f32 %v90_v22, %v55_v19 }
  0x8f   :  { %148 = vpow2.f32 %v103_v20 }
  0x90   :  { %150 = vpow2.f32 %v105_v21  ;;  %v99_v24 = vadd.f32 %v147_v10, %v91_v23 }
  0x92   :  { %v102_v25 = vmin.f32 %v99_v24, 0.0 }
  0x94   :  { %v107_v27 = vmul.f32 1.442695, %v102_v25 }
  0x95   :  { %v149_v28 = vpop.eup %148 }
  0x96   :  { %v151_v29 = vpop.eup %150  ;;  %v110_v30 = vmul.f32 %v149_v28, %v109_v26  ;;  %152 = vpow2.f32 %v107_v27 }
  0x97   :  { %v111_v31 = vmul.f32 %v151_v29, %v109_v26 }
  0x98   :  { %113 = vst [vmem:[#allocation5] sm:$0xff] %v110_v30 }
  0x99   :  { %114 = vst [vmem:[#allocation5 + $0x8] sm:$0xff] %v111_v31 }
  0x9c   :  { %v153_v32 = vpop.eup %152 }
  0x9d   :  { %v112_v33 = vmul.f32 %v153_v32, %v109_v26 }
  0x9f   :  { %115 = vst [vmem:[#allocation5 + $0x10] sm:$0xff] %v112_v33 }
  0xa0   :  { %128 = dma.vmem_to_hbm [thread:$0]  %s121_s4, 384, %s123_s13, [#allocation3], %s197_s14, %s197_s14, %s198_s15  }
  0xa1   :  { %192 = dma.done.wait [#allocation3], 384  }
  0xa2   :  { %193 = vsyncadd [#allocation3], 4294966912 }
  0xa3   :  { %133 = vsyncpa [#allocation3], 1 }
  0xa4   :  { %134 = vsyncpa [#allocation4], 1 }

</bundles_post_ra>
